<compile_context>
chip_gen: v6e
topology: v6e:2x2x1
jax: 0.10.0
libtpu: 0.0.40
codegen_flags: <defaults>
</compile_context>

<pallas_src>
import jax
import jax.numpy as jnp
from jax import lax
from jax.experimental import pallas as pl
from jax.experimental.pallas import tpu as pltpu


# Plain NN contraction: W (out, in) @ act (in, tb) -> (out, tb).
# LHS contraction on its minor axis, RHS contraction on its major axis ==
# the MXU-native A[M,K] @ B[K,N] feed; no relayout needed.
_NN = (((1,), (0,)), ((), ()))


def actor_net_kernel(x_ref, w1_ref, b1_ref, w2_ref, b2_ref, w3_ref, b3_ref,
                     o_ref):
    xT = x_ref[...]                                   # (in_dim, tb), batch on lanes

    # fc1 + ReLU
    h1 = lax.dot_general(w1_ref[...], xT, _NN,
                         preferred_element_type=jnp.float32)
    h1 = jnp.maximum(h1 + b1_ref[...], 0.0)           # (hidden, tb)

    # fc2 + ReLU
    h2 = lax.dot_general(w2_ref[...], h1, _NN,
                         preferred_element_type=jnp.float32)
    h2 = jnp.maximum(h2 + b2_ref[...], 0.0)           # (hidden, tb)

    # fc3
    logits = lax.dot_general(w3_ref[...], h2, _NN,
                             preferred_element_type=jnp.float32)
    logits = logits + b3_ref[...]                     # (out_dim, tb)

    # Numerically stable softmax over the feature axis (axis 0 here, which is
    # the last axis of the untransposed PyTorch output).  out_dim is small,
    # so this is a cheap cross-sublane reduction on the XLU.
    m = jnp.max(logits, axis=0, keepdims=True)        # (1, tb)
    e = jnp.exp(logits - m)
    inv = pl.reciprocal(jnp.sum(e, axis=0, keepdims=True), approx=False)
    o_ref[...] = (e * inv).astype(o_ref.dtype)


def prepare_params(params):
    """One-time (outside the hot path) param prep.

    Weights stay in PyTorch (out, in) layout -- with batch-on-lanes that is
    already the MXU-native LHS.  Biases become (n, 1) columns so they
    broadcast across the lane (batch) axis inside the kernel.
    """
    return {
        "w1": params["w1"], "b1": params["b1"][:, None],
        "w2": params["w2"], "b2": params["b2"][:, None],
        "w3": params["w3"], "b3": params["b3"][:, None],
    }


def _pick_tile(B, block_batch):
    """Lane tile for the batch axis.

    Multiples of 128 (lane width); capped so a single tile never exceeds the
    (128-padded) batch; and kept small enough that the grid has >= 2 steps
    when the batch allows it, so both v7x TensorCores get work.
    """
    tb = min(block_batch, 128 * pl.cdiv(B, 128))
    if B > 128 and pl.cdiv(B, tb) < 2:
        tb = 128 * pl.cdiv(pl.cdiv(B, 2), 128)
    return tb


def actor_net_forward(x, prep, *, block_batch=512):
    """x: [B, input] float32; prep: output of prepare_params."""
    B, in_dim = x.shape
    hidden = prep["w1"].shape[0]
    out_dim = prep["w3"].shape[0]

    # Batch on lanes: one small transpose outside the kernel.
    xT = x.T                                           # (in_dim, B)

    tb = _pick_tile(B, block_batch)
    grid = (pl.cdiv(B, tb),)                           # padded tail block is harmless:
                                                       # columns are independent and the
                                                       # OOB part of the store is dropped.

    def resident(shape):
        # Full-array block, same block index every grid step -> loaded to
        # VMEM once and reused (no per-step DMA).
        return pl.BlockSpec(shape, lambda i: (0, 0))

    outT = pl.pallas_call(
        actor_net_kernel,
        out_shape=jax.ShapeDtypeStruct((out_dim, B), jnp.float32),
        grid=grid,
        in_specs=[
            pl.BlockSpec((in_dim, tb), lambda i: (0, i)),      # activations
            resident((hidden, in_dim)), resident((hidden, 1)),  # fc1
            resident((hidden, hidden)), resident((hidden, 1)),  # fc2
            resident((out_dim, hidden)), resident((out_dim, 1)),  # fc3
        ],
        out_specs=pl.BlockSpec((out_dim, tb), lambda i: (0, i)),
        compiler_params=pltpu.CompilerParams(
            dimension_semantics=("parallel",)),  # 2 TCs on v7x split the batch
    )(xT, prep["w1"], prep["b1"], prep["w2"], prep["b2"],
      prep["w3"], prep["b3"])

    return outT.T                                      # back to (B, out_dim)


def init_params(key, input_dim, hidden_dim, output_dim):
    """Deterministic init mimicking nn.Linear's uniform(-1/sqrt(fan_in), +)."""
    ks = jax.random.split(key, 6)

    def lin(kw, kb, fan_in, fan_out):
        bound = 1.0 / jnp.sqrt(fan_in)
        w = jax.random.uniform(kw, (fan_out, fan_in), jnp.float32, -bound, bound)
        b = jax.random.uniform(kb, (fan_out,), jnp.float32, -bound, bound)
        return w, b

    w1, b1 = lin(ks[0], ks[1], input_dim, hidden_dim)
    w2, b2 = lin(ks[2], ks[3], hidden_dim, hidden_dim)
    w3, b3 = lin(ks[4], ks[5], hidden_dim, output_dim)
    return {"w1": w1, "b1": b1, "w2": w2, "b2": b2, "w3": w3, "b3": b3}


def reference_forward(x, params):
    h1 = jnp.maximum(x @ params["w1"].T + params["b1"], 0.0)
    h2 = jnp.maximum(h1 @ params["w2"].T + params["b2"], 0.0)
    logits = h2 @ params["w3"].T + params["b3"]
    return jax.nn.softmax(logits, axis=-1)


if __name__ == "__main__":
    key = jax.random.PRNGKey(0)
    k_x, k_p = jax.random.split(key)

    # Batch sized so the grid actually iterates (2 steps of 128 columns).
    batch, input_dim, hidden_dim, output_dim = 256, 16, 32, 8

    x = jax.random.normal(k_x, (batch, input_dim), jnp.float32)
    params = init_params(k_p, input_dim, hidden_dim, output_dim)

    prep = prepare_params(params)          # one-time, outside the hot path
    out = actor_net_forward(x, prep)
    out = jax.block_until_ready(out)

    # sanity: shape, softmax rows sum to 1, and match a pure-JAX reference.
    assert out.shape == (batch, output_dim)
    row_sums = jnp.sum(out, axis=-1)
    assert bool(jnp.all(jnp.abs(row_sums - 1.0) < 1e-3))
    ref = reference_forward(x, params)
    assert bool(jnp.all(jnp.abs(out - ref) < 2e-3))

    print("KERNEL_OK")
</pallas_src>

<mosaic_0001>
module attributes {stable_mosaic.version = 11 : i64} {
  func.func @actor_net_kernel(%arg0: i32, %arg1: memref<16x128xf32, #tpu.memory_space<vmem>>, %arg2: memref<32x16xf32, #tpu.memory_space<vmem>>, %arg3: memref<32x1xf32, #tpu.memory_space<vmem>>, %arg4: memref<32x32xf32, #tpu.memory_space<vmem>>, %arg5: memref<32x1xf32, #tpu.memory_space<vmem>>, %arg6: memref<8x32xf32, #tpu.memory_space<vmem>>, %arg7: memref<8x1xf32, #tpu.memory_space<vmem>>, %arg8: memref<8x128xf32, #tpu.memory_space<vmem>>) attributes {dimension_semantics = [#tpu.dimension_semantics<parallel>], iteration_bounds = array<i64: 2>, scalar_prefetch = 0 : i64, scratch_operands = 0 : i64, tpu.core_type = #tpu.core_type<tc>, window_params = [{transform_indices = @transform_0, window_bounds = array<i64: 16, 128>}, {pipeline_mode = #tpu.pipeline_mode<synchronous>, transform_indices = @transform_1, window_bounds = array<i64: 32, 16>}, {pipeline_mode = #tpu.pipeline_mode<synchronous>, transform_indices = @transform_2, window_bounds = array<i64: 32, 1>}, {pipeline_mode = #tpu.pipeline_mode<synchronous>, transform_indices = @transform_3, window_bounds = array<i64: 32, 32>}, {pipeline_mode = #tpu.pipeline_mode<synchronous>, transform_indices = @transform_4, window_bounds = array<i64: 32, 1>}, {pipeline_mode = #tpu.pipeline_mode<synchronous>, transform_indices = @transform_5, window_bounds = array<i64: 8, 32>}, {pipeline_mode = #tpu.pipeline_mode<synchronous>, transform_indices = @transform_6, window_bounds = array<i64: 8, 1>}, {transform_indices = @transform_7, window_bounds = array<i64: 8, 128>}]} {
    %c0 = arith.constant 0 : index
    %c0_0 = arith.constant 0 : index
    %0 = vector.load %arg1[%c0, %c0_0] : memref<16x128xf32, #tpu.memory_space<vmem>>, vector<16x128xf32>
    %c0_1 = arith.constant 0 : index
    %c0_2 = arith.constant 0 : index
    %1 = vector.load %arg2[%c0_1, %c0_2] : memref<32x16xf32, #tpu.memory_space<vmem>>, vector<32x16xf32>
    %cst = arith.constant dense<0.000000e+00> : vector<32x128xf32>
    %2 = tpu.matmul %1, %0, %cst {dimension_numbers = #tpu.dot_dimension_numbers<[1], [0], [0], [1], [0, 0, 1, 1], [], []>} : vector<32x16xf32>, vector<16x128xf32>, vector<32x128xf32> -> vector<32x128xf32>
    %c0_3 = arith.constant 0 : index
    %c0_4 = arith.constant 0 : index
    %3 = vector.load %arg3[%c0_3, %c0_4] : memref<32x1xf32, #tpu.memory_space<vmem>>, vector<32x1xf32>
    %4 = vector.broadcast %3 : vector<32x1xf32> to vector<32x128xf32>
    %5 = arith.addf %2, %4 : vector<32x128xf32>
    %cst_5 = arith.constant 0.000000e+00 : f32
    %6 = vector.broadcast %cst_5 : f32 to vector<32x128xf32>
    %7 = arith.maximumf %5, %6 : vector<32x128xf32>
    %c0_6 = arith.constant 0 : index
    %c0_7 = arith.constant 0 : index
    %8 = vector.load %arg4[%c0_6, %c0_7] : memref<32x32xf32, #tpu.memory_space<vmem>>, vector<32x32xf32>
    %cst_8 = arith.constant dense<0.000000e+00> : vector<32x128xf32>
    %9 = tpu.matmul %8, %7, %cst_8 {dimension_numbers = #tpu.dot_dimension_numbers<[1], [0], [0], [1], [0, 0, 1, 1], [], []>} : vector<32x32xf32>, vector<32x128xf32>, vector<32x128xf32> -> vector<32x128xf32>
    %c0_9 = arith.constant 0 : index
    %c0_10 = arith.constant 0 : index
    %10 = vector.load %arg5[%c0_9, %c0_10] : memref<32x1xf32, #tpu.memory_space<vmem>>, vector<32x1xf32>
    %11 = vector.broadcast %10 : vector<32x1xf32> to vector<32x128xf32>
    %12 = arith.addf %9, %11 : vector<32x128xf32>
    %cst_11 = arith.constant 0.000000e+00 : f32
    %13 = vector.broadcast %cst_11 : f32 to vector<32x128xf32>
    %14 = arith.maximumf %12, %13 : vector<32x128xf32>
    %c0_12 = arith.constant 0 : index
    %c0_13 = arith.constant 0 : index
    %15 = vector.load %arg6[%c0_12, %c0_13] : memref<8x32xf32, #tpu.memory_space<vmem>>, vector<8x32xf32>
    %cst_14 = arith.constant dense<0.000000e+00> : vector<8x128xf32>
    %16 = tpu.matmul %15, %14, %cst_14 {dimension_numbers = #tpu.dot_dimension_numbers<[1], [0], [0], [1], [0, 0, 1, 1], [], []>} : vector<8x32xf32>, vector<32x128xf32>, vector<8x128xf32> -> vector<8x128xf32>
    %c0_15 = arith.constant 0 : index
    %c0_16 = arith.constant 0 : index
    %17 = vector.load %arg7[%c0_15, %c0_16] : memref<8x1xf32, #tpu.memory_space<vmem>>, vector<8x1xf32>
    %18 = vector.broadcast %17 : vector<8x1xf32> to vector<8x128xf32>
    %19 = arith.addf %16, %18 : vector<8x128xf32>
    %cst_17 = arith.constant dense<0xFF800000> : vector<128xf32>
    %20 = vector.multi_reduction <maximumf>, %19, %cst_17 [0] : vector<8x128xf32> to vector<128xf32>
    %21 = vector.shape_cast %20 : vector<128xf32> to vector<1x128xf32>
    %22 = vector.broadcast %21 : vector<1x128xf32> to vector<8x128xf32>
    %23 = arith.subf %19, %22 : vector<8x128xf32>
    %24 = math.exp %23 : vector<8x128xf32>
    %cst_18 = arith.constant dense<0.000000e+00> : vector<128xf32>
    %25 = vector.multi_reduction <add>, %24, %cst_18 [0] : vector<8x128xf32> to vector<128xf32>
    %26 = vector.shape_cast %25 : vector<128xf32> to vector<1x128xf32>
    %27 = tpu.reciprocal %26 : vector<1x128xf32> -> vector<1x128xf32>
    %28 = vector.broadcast %27 : vector<1x128xf32> to vector<8x128xf32>
    %29 = arith.mulf %24, %28 : vector<8x128xf32>
    %c0_19 = arith.constant 0 : index
    %c0_20 = arith.constant 0 : index
    %30 = vector.load %arg8[%c0_19, %c0_20] : memref<8x128xf32, #tpu.memory_space<vmem>>, vector<8x128xf32>
    tpu.vector_store %arg8[%c0_19, %c0_20], %29 {strides = array<i32>} : memref<8x128xf32, #tpu.memory_space<vmem>>, vector<8x128xf32>,
    return
  }
  func.func @transform_0(%arg0: i32) -> (i32, i32) {
    %c0_i32 = arith.constant 0 : i32
    %c0_i32_0 = arith.constant 0 : i32
    return %c0_i32, %arg0 : i32, i32
  }
  func.func @transform_1(%arg0: i32) -> (i32, i32) {
    %c0_i32 = arith.constant 0 : i32
    %c0_i32_0 = arith.constant 0 : i32
    %c0_i32_1 = arith.constant 0 : i32
    return %c0_i32, %c0_i32_0 : i32, i32
  }
  func.func @transform_2(%arg0: i32) -> (i32, i32) {
    %c0_i32 = arith.constant 0 : i32
    %c0_i32_0 = arith.constant 0 : i32
    %c0_i32_1 = arith.constant 0 : i32
    return %c0_i32, %c0_i32_0 : i32, i32
  }
  func.func @transform_3(%arg0: i32) -> (i32, i32) {
    %c0_i32 = arith.constant 0 : i32
    %c0_i32_0 = arith.constant 0 : i32
    %c0_i32_1 = arith.constant 0 : i32
    return %c0_i32, %c0_i32_0 : i32, i32
  }
  func.func @transform_4(%arg0: i32) -> (i32, i32) {
    %c0_i32 = arith.constant 0 : i32
    %c0_i32_0 = arith.constant 0 : i32
    %c0_i32_1 = arith.constant 0 : i32
    return %c0_i32, %c0_i32_0 : i32, i32
  }
  func.func @transform_5(%arg0: i32) -> (i32, i32) {
    %c0_i32 = arith.constant 0 : i32
    %c0_i32_0 = arith.constant 0 : i32
    %c0_i32_1 = arith.constant 0 : i32
    return %c0_i32, %c0_i32_0 : i32, i32
  }
  func.func @transform_6(%arg0: i32) -> (i32, i32) {
    %c0_i32 = arith.constant 0 : i32
    %c0_i32_0 = arith.constant 0 : i32
    %c0_i32_1 = arith.constant 0 : i32
    return %c0_i32, %c0_i32_0 : i32, i32
  }
  func.func @transform_7(%arg0: i32) -> (i32, i32) {
    %c0_i32 = arith.constant 0 : i32
    %c0_i32_0 = arith.constant 0 : i32
    return %c0_i32, %arg0 : i32, i32
  }
}

</mosaic_0001>

<bundles_post_ra>
// kernel: tpu_custom_call.1
= control target key start
LH: loop header
LB: loop body
LE: loop exit
PB: predicated region body
PF: predicated region fallthrough
CT: control target
= control target key end

     0   :  { %12 = vsyncpa [#allocation4], 0  ;;  %s1144_s0 = inlined_call_operand.vmem [shape: f32[16,256], index: 0, kind: input, shape index: {}]   ;;  %s1145_s1 = inlined_call_operand.vmem [shape: f32[32,16], index: 1, kind: input, shape index: {}]   ;;  %s1146_s2 = inlined_call_operand.vmem [shape: f32[32,1], index: 2, kind: input, shape index: {}]   ;;  %s1147_s3 = inlined_call_operand.vmem [shape: f32[32,32], index: 3, kind: input, shape index: {}]   ;;  %s1148_s4 = inlined_call_operand.vmem [shape: f32[32,1], index: 4, kind: input, shape index: {}]   ;;  %s1149_s5 = inlined_call_operand.vmem [shape: f32[8,32], index: 5, kind: input, shape index: {}]   ;;  %s1150_s6 = inlined_call_operand.vmem [shape: f32[8,1], index: 6, kind: input, shape index: {}]   ;;  %s1151_s7 = inlined_call_operand.hbm [shape: f32[8,256], index: 7, kind: output, shape index: {}]  }
   0x1   :  { %14 = vsyncpa [#allocation4 + $0x1], 0  ;;  %s984_s24 = smov 0   ;;  %s986_s25 = smov 0  }
   0x2   :  { %s988_s26 = smov 0   ;;  %s990_s27 = smov 0  }
   0x3 LB: > { %s754_s28 = sadd.s32 4294967295, %s938_s27   ;;  %s755_s29 = sadd.s32 4294967294, %s938_s27   ;;  %s938_s27 = sphi %s990_s27, %s1159_s27   ;;  %s934_s26 = sphi %s988_s26, %s1158_s26   ;;  %s930_s25 = sphi %s986_s25, %s1157_s25   ;;  %s926_s24 = sphi %s984_s24, %s1156_s24  }
   0x4   : > { %s1007_s30 = sadd.s32 1, %s938_s27   ;;  %s27_s8 = sadd.s32 1, %s934_s26 }
   0x5   : > { %s24_s9 = ssub.s32 %s938_s27, %s1007_s30  ;;  %p34_p0 = scmp.ne.s32.totalorder %s934_s26, %s930_s25 }
   0x6   : > { %p25_p1 = scmp.eq.s32.totalorder %s24_s9, 0  ;;  %p35_p2 = scmp.eq.s32.totalorder %s938_s27, 0 }
   0x7   : > { %p190_p3 = scmp.eq.s32.totalorder %s754_s28, 1  ;;  %p195_p4 = scmp.ne.s32.totalorder %s930_s25, %s926_s24 }
   0x8   : > { %s1020_s10 = scalar_select %p25_p1, %s934_s26, %s27_s8  }
   0x9   : > { %p36_p5 = por %p35_p2, %p34_p0  ;;  %p1022_p6 = por %p190_p3, %p34_p0 }
   0xa   : > { %p196_p7 = scmp.eq.s32.totalorder %s755_s29, 1  ;;  %p1152_p9 = scmp.ge.s32.totalorder %s938_s27, 2 }
   0xc   : > { %p1026_p8 = por %p196_p7, %p195_p4  ;;  %230 = sbr.rel (%p1152_p9) target bundleno = 22 (0x16), region = 40 }
  0x11   : > { %233 = sbr.rel (!%p36_p5) target bundleno = 22 (0x16), region = 44  ;;  %s235_s13 = sand.u32 (%p36_p5), 1, %s934_s26  }
  0x12   : > { %s759_s14 = sshll.u32 (%p36_p5), %s938_s27, 3  ;;  %s758_s15 = sshll.u32 (%p36_p5), %s235_s13, 4 }
  0x13   : > { %s239_s18 = scalar_lea.vmem (%p36_p5), %s1144_s0, %s759_s14  ;;  %s237_s19 = scalar_lea.vmem (%p36_p5), [#allocation2], %s758_s15 }
  0x14   : > { %v270_v0 = vld [vmem:[%s239_s18] sm:$0xff] (%p36_p5)  ;;  %v272_v1 = vld [vmem:[%s239_s18 + $0x10] sm:$0xff] (%p36_p5) }
  0x15   : > { %271 = vst [vmem:[%s237_s19] sm:$0xff] (%p36_p5), %v270_v0  ;;  %273 = vst [vmem:[%s237_s19 + $0x8] sm:$0xff] (%p36_p5), %v272_v1 }
  0x16 PF: > { %p760_p10 = scmp.ge.s32.totalorder %s938_s27, 1  ;;  %p278_p11 = scmp.lt.s32.totalorder %s938_s27, 3 }
  0x18   : > { %p279_p12 = pnand %p760_p10, %p278_p11 }
  0x19   : > { %s1041_s20 = sand.u32 (!%p279_p12), 1, %s930_s25   ;;  %s773_s21 = sshll.u32 (!%p279_p12), %s754_s28, 7 }
  0x1a   : > { %282 = sbr.rel (%p279_p12) target bundleno = 721 (0x2d1), region = 82  ;;  %s761_s23 = sshll.u32 (!%p279_p12), %s1041_s20, 4 }
  0x1b   : > { %s287_s14 = scalar_lea.vmem (!%p279_p12), [#allocation2], %s761_s23  ;;  %s762_s19 = sshll.u32 (!%p279_p12), %s1041_s20, 3 }
  0x1c   : > { %s315_s22 = scalar_lea.vmem (!%p279_p12), [#allocation3], %s762_s19  ;;  %s688_s9 = scalar_lea.hbm (!%p279_p12), %s1151_s7, %s773_s21 }
  0x1d   : > { %s690_s23 = sshll.u32 (!%p279_p12), %s315_s22, 4  ;;  %s677_s13 = scalar_lea.sflag (!%p279_p12), [#allocation4], %s1041_s20  ;;  %s691_s23 = int_to_ptr.vmem [resolvable:$true] %s690_s23 }
  0x1e   : > { %s943_s15 = smov (!%p279_p12), [#allocation3]  }
  0x1f   : > { %v318_v2 = vld [vmem:[%s1145_s1] sm:$0xff]  ;;  %vm346_vm0 = vcmask 130048   ;;  %v940_v3 = vmov 0   ;;  %v325_v4 = vld [vmem:[%s1146_s2 + $0x18] sm:$0xff]  ;;  %v323_v5 = vld [vmem:[%s1146_s2 + $0x8] sm:$0xff]  ;;  %vm476_vm1 = vcmask 261120  }
  0x20   : > { %799 = vmatprep.mubr.msk.f32.mxu0 %vm346_vm0, %v318_v2  ;;  %872 = vset.pattern.permute.xlu0 %v940_v3  ;;  %v317_v6 = vld [vmem:[%s287_s14 + $0x8] sm:$0xff]  ;;  %v316_v7 = vld [vmem:[%s287_s14] sm:$0xff]  ;;  %v941_v38 = vmov 0.0   ;;  %vm942_vm2 = vmmov 0   ;;  %s878_s14 = scalar_lea.vmem %s691_s23, 128  ;;  %s882_s16 = sshll.u32 %s943_s15, 4  ;;  %s883_s16 = int_to_ptr.vmem [resolvable:$false] %s882_s16 }
  0x21   : > { %343 = vperm.xlu0 %872, %v325_v4   ;;  %873 = vset.pattern.permute.xlu1 %v940_v3  ;;  %v324_v8 = vld [vmem:[%s1146_s2 + $0x10] sm:$0xff]  ;;  %v322_v9 = vld [vmem:[%s1146_s2] sm:$0xff]  ;;  %v319_v10 = vld [vmem:[%s1145_s1 + $0x8] sm:$0xff]  ;;  %p879_p13 = scmp.ne.s32.totalorder %s691_s23, %s878_s14  ;;  %s884_s28 = scalar_lea.vmem %s883_s16, 256 }
  0x22   : > { %333 = vperm.xlu1 %873, %v323_v5   ;;  %795 = vmatprep.subr.mxu0 %v317_v6  ;;  %v320_v11 = vld [vmem:[%s1145_s1 + $0x10] sm:$0xff]  ;;  %v455_v12 = vld [vmem:[%s1148_s4 + $0x18] sm:$0xff]  ;;  %v453_v15 = vld [vmem:[%s1148_s4 + $0x8] sm:$0xff]  ;;  %p885_p2 = scmp.lt.s32.totalorder %s691_s23, %s883_s16  ;;  %p886_p3 = scmp.lt.s32.totalorder %s884_s28, %s878_s14 }
  0x23   : > { %796 = vmatpush3.msra.mxu0 %v317_v6  ;;  %v454_v13 = vld [vmem:[%s1148_s4 + $0x10] sm:$0xff]  ;;  %v321_v14 = vld [vmem:[%s1145_s1 + $0x18] sm:$0xff]  ;;  %v452_v16 = vld [vmem:[%s1148_s4] sm:$0xff]  ;;  %p880_p0 = pnand %p879_p13, %p1022_p6 }
  0x24   : > { %797 = vmatprep.subr.mxu0 %v316_v7  ;;  %v579_v17 = vld [vmem:[%s1150_s6] sm:$0xff]  ;;  %v449_v35 = vld [vmem:[%s1147_s3 + $0x8] sm:$0xff]  ;;  %v450_v36 = vld [vmem:[%s1147_s3 + $0x10] sm:$0xff]  ;;  %p887_p4 = por %p886_p3, %p885_p2 }
  0x25   : > { %338 = vperm.xlu0 %872, %v324_v8   ;;  %798 = vmatpush3.msra.mxu0 %v316_v7  ;;  %v448_v18 = vld [vmem:[%s1147_s3] sm:$0xff]  ;;  %v451_v37 = vld [vmem:[%s1147_s3 + $0x18] sm:$0xff]  ;;  %p881_p1 = pneg %p880_p0 }
  0x26   : > { %328 = vperm.xlu1 %873, %v322_v9   ;;  %800 = vmatmul.mubr.msk.f32.vlgmr.msra.gmra.mxu0 %vm346_vm0, %v319_v10  ;;  %v578_v55 = vld [vmem:[%s1149_s5] sm:$0xff] }
  0x27   : > { %802 = vmatprep.mubr.msk.f32.mxu0 %vm346_vm0, %v320_v11  ;;  %813 = vmatprep.mubr.msk.f32.mxu1 %vm476_vm1, %v448_v18  ;;  %p888_p5 = pnand %p887_p4, %p881_p1 }
  0x28   : > { %819 = vmatprep.subr.mxu0 %v941_v38 }
  0x29   : > { %473 = vperm.xlu0 %872, %v455_v12  }
  0x2a   : > { %468 = vperm.xlu1 %873, %v454_v13   ;;  %803 = vmatmul.mubr.msk.f32.gmra.mxu0 %vm346_vm0, %v321_v14 }
  0x2b   : > { %827 = vmatprep.mubr.msk.f32.mxu0 %vm942_vm2, %v941_v38 }
  0x2d   : > { %463 = vperm.xlu0 %872, %v453_v15  }
  0x2e   : > { %458 = vperm.xlu1 %873, %v452_v16  }
  0x31   : > { %582 = vperm.xlu0 %872, %v579_v17  }
  0x9c   : > { %v344_v19 = vpop.permute.xlu0 %343 }
  0x9d   : > { %v334_v21 = vpop.permute.xlu1 %333 }
  0xa0   : > { %v339_v25 = vpop.permute.xlu0 %338 }
  0xa1   : > { %v329_v30 = vpop.permute.xlu1 %328 }
  0xa4   : > { %v474_v39 = vpop.permute.xlu0 %473 }
  0xa5   : > { %v469_v41 = vpop.permute.xlu1 %468 }
  0xa8   : > { %v464_v45 = vpop.permute.xlu0 %463 }
  0xa9   : > { %v459_v50 = vpop.permute.xlu1 %458 }
  0xac   : > { %v583_v56 = vpop.permute.xlu0 %582 }
  0xe6   : > { %v801_v20 = vpop.f32.mrf.mxu0 }
  0xe7   : > { %v431_v27 = vadd.f32 %v801_v20, %v334_v21 }
  0xe8   : > { %v425_v22 = vpop.f32.mrf.mxu0 }
  0xe9   : > { %v426_v31 = vadd.f32 %v425_v22, %v329_v30  ;;  %v445_v33 = vmax.f32 %v431_v27, 0.0 }
  0xea   : > { %v804_v23 = vpop.f32.mrf.mxu0 }
  0xeb   : > { %v441_v24 = vadd.f32 %v804_v23, %v344_v19  ;;  %v444_v34 = vmax.f32 %v426_v31, 0.0 }
  0xec   : > { %v435_v26 = vpop.f32.mrf.mxu0 }
  0xed   : > { %v447_v28 = vmax.f32 %v441_v24, 0.0  ;;  %v436_v29 = vadd.f32 %v435_v26, %v339_v25 }
  0xef   : > { %v446_v32 = vmax.f32 %v436_v29, 0.0  ;;  %805 = vmatprep.subr.mxu1 %v447_v28 }
  0xf0   : > { %806 = vmatpush3.msra.mxu1 %v447_v28 }
  0xf1   : > { %807 = vmatprep.subr.mxu1 %v446_v32 }
  0xf2   : > { %808 = vmatpush3.msra.mxu1 %v446_v32 }
  0xf3   : > { %809 = vmatprep.subr.mxu1 %v445_v33 }
  0xf4   : > { %810 = vmatpush3.msra.mxu1 %v445_v33 }
  0xf5   : > { %811 = vmatprep.subr.mxu1 %v444_v34 }
  0xf6   : > { %812 = vmatpush3.msra.mxu1 %v444_v34 }
  0xf7   : > { %814 = vmatmul.mubr.msk.f32.vlgmr.msra.gmra.mxu1 %vm476_vm1, %v449_v35 }
  0xf8   : > { %816 = vmatprep.mubr.msk.f32.mxu1 %vm476_vm1, %v450_v36 }
  0xfb   : > { %817 = vmatmul.mubr.msk.f32.gmra.mxu1 %vm476_vm1, %v451_v37 }
 0x1b7   : > { %v815_v40 = vpop.f32.mrf.mxu1 }
 0x1b8   : > { %v561_v47 = vadd.f32 %v815_v40, %v464_v45 }
 0x1b9   : > { %v555_v42 = vpop.f32.mrf.mxu1 }
 0x1ba   : > { %v556_v51 = vadd.f32 %v555_v42, %v459_v50  ;;  %v575_v53 = vmax.f32 %v561_v47, 0.0 }
 0x1bb   : > { %v818_v43 = vpop.f32.mrf.mxu1 }
 0x1bc   : > { %v571_v44 = vadd.f32 %v818_v43, %v474_v39  ;;  %v574_v54 = vmax.f32 %v556_v51, 0.0 }
 0x1bd   : > { %v565_v46 = vpop.f32.mrf.mxu1 }
 0x1be   : > { %v577_v48 = vmax.f32 %v571_v44, 0.0  ;;  %v566_v49 = vadd.f32 %v565_v46, %v469_v41 }
 0x1c0   : > { %v576_v52 = vmax.f32 %v566_v49, 0.0  ;;  %820 = vmatpush3.msra.mxu0 %v577_v48 }
 0x1c1   : > { %821 = vmatprep.subr.mxu0 %v941_v38 }
 0x1c2   : > { %822 = vmatpush3.msra.mxu0 %v576_v52 }
 0x1c3   : > { %823 = vmatprep.subr.mxu0 %v941_v38 }
 0x1c4   : > { %824 = vmatpush3.msra.mxu0 %v575_v53 }
 0x1c5   : > { %825 = vmatprep.subr.mxu0 %v941_v38 }
 0x1c6   : > { %826 = vmatpush3.msra.mxu0 %v574_v54 }
 0x1c7   : > { %828 = vmatmul.mubr.msk.f32.vlgmr.msra.gmra.mxu0 %vm476_vm1, %v578_v55 }
 0x287   : > { %v654_v57 = vpop.f32.mrf.mxu0 }
 0x288   : > { %v655_v58 = vadd.f32 %v654_v57, %v583_v56 }
 0x289   : > { %v829_v59 = vpop.f32.mrf.mxu0 }
 0x28a   : > { %v658_v60 = vrot.slane %v655_v58, 4 }
 0x28c   : > { %v659_v61 = vmax.f32 %v655_v58, %v658_v60 }
 0x28e   : > { %v660_v62 = vrot.slane %v659_v61, 2 }
 0x290   : > { %v661_v63 = vmax.f32 %v659_v61, %v660_v62 }
 0x292   : > { %v662_v0 = vrot.slane %v661_v63, 1 }
 0x294   : > { %v663_v1 = vmax.f32 %v661_v63, %v662_v0 }
 0x296   : > { %v664_v2 = vsub.f32 %v655_v58, %v663_v1 }
 0x298   : > { %v665_v3 = vmul.f32 1.442695, %v664_v2 }
 0x29a   : > { %874 = vpow2.f32 %v665_v3 }
 0x2a7   : > { %v875_v4 = vpop.eup %874 }
 0x2a8   : > { %v667_v5 = vrot.slane %v875_v4, 4 }
 0x2aa   : > { %v668_v6 = vadd.f32 %v875_v4, %v667_v5 }
 0x2ac   : > { %v669_v7 = vrot.slane %v668_v6, 2 }
 0x2ae   : > { %v670_v8 = vadd.f32 %v669_v7, %v668_v6 }
 0x2b0   : > { %v671_v9 = vrot.slane %v670_v8, 1 }
 0x2b2   : > { %v672_v10 = vadd.f32 %v671_v9, %v670_v8 }
 0x2b4   : > { %876 = vrcp.f32 %v672_v10 }
 0x2c1   : > { %v877_v11 = vpop.eup %876 }
 0x2c2   : > { %v674_v12 = vmul.f32 %v877_v11, %v875_v4 }
 0x2c4   : > { %675 = vst [vmem:[%s315_s22] sm:$0xff] %v674_v12 }
 0x2c5   : > { %891 = shalt.err (!%p888_p5)
}
 0x2c6   : > { %s892_s17 = scalar_lea.hbm %s688_s9, 128  ;;  %s896_s19 = scalar_lea.hbm %s1151_s7, 256 }
 0x2c7   : > { %p893_p7 = scmp.ne.s32.totalorder %s688_s9, %s892_s17  ;;  %p897_p12 = scmp.lt.s32.totalorder %s688_s9, %s1151_s7 }
 0x2c8   : > { %p898_p13 = scmp.lt.s32.totalorder %s896_s19, %s892_s17 }
 0x2c9   : > { %p894_p10 = pnand %p893_p7, %p1022_p6 }
 0x2ca   : > { %p899_p0 = por %p898_p13, %p897_p12 }
 0x2cb   : > { %p895_p11 = pneg %p894_p10 }
 0x2cd   : > { %p900_p9 = pnand %p899_p0, %p895_p11 }
 0x2cf   : > { %903 = shalt.err (!%p900_p9)
}
 0x2d0   : > { %830 = dma.vmem_to_hbm [thread:$0]  (%p1022_p6), %s691_s23, 128, %s688_s9, %s677_s13  }
 0x2d1 PF: > { %s702_s29 = sand.u32 1, %s926_s24   ;;  %p1155_p1 = scmp.ge.s32.totalorder %s938_s27, 2 }
 0x2d2   : > { %s703_s8 = scalar_lea.sflag [#allocation4], %s702_s29 }
 0x2d3   : > { %p833_p2 = pnand %p1155_p1, %p1026_p8 }
 0x2d5   : > { %p834_p3 = pneg %p833_p2 }
 0x2d7   : > { %921 = dma.done.wait (%p834_p3), %s703_s8, 128  }
 0x2d8   : > { %923 = vsyncadd (%p834_p3), %s703_s8, 4294967168  ;;  %p17_p9 = scmp.ge.s32.totalorder %s1007_s30, 4   ;;  %s1156_s24 = smov %s930_s25 }
 0x2d9   : > { %s1157_s25 = smov %s934_s26  ;;  %s1158_s26 = smov %s1020_s10 }
 0x2da   : > { %s1159_s27 = smov %s1007_s30  ;;  %19 = sbr.rel (!%p17_p9) target bundleno = 3 (0x3), region = 126 }
 0x2df   :  { %708 = vsyncpa [#allocation4], 1 }
 0x2e0   :  { %710 = vsyncpa [#allocation4 + $0x1], 1 }

</bundles_post_ra>
